<compile_context>
chip_gen: v6e
topology: v6e:2x2x1
jax: 0.10.0
libtpu: 0.0.40
codegen_flags: <defaults>
</compile_context>

<pallas_src>
import math

import jax
import jax.numpy as jnp
from jax.experimental import pallas as pl
from jax.experimental.pallas import tpu as pltpu

# ----------------------- small synthetic config -----------------------
VOCAB = 128          # stands in for len(tokenizer) after resize_token_embeddings
HIDDEN = 32          # electra hidden_size (base=768) shrunk
N_LAYERS = 2         # base=12 shrunk
N_HEADS = 4          # base=12 shrunk
HEAD_DIM = HIDDEN // N_HEADS
INTERMEDIATE = 64    # base=3072 shrunk
MAX_POS = 64
TYPE_VOCAB = 2
LN_EPS = 1e-12       # Electra layer_norm_eps

# rows of the packed per-layer small-parameter block (biases + LN params)
(ROW_QKV_B, ROW_I_B, ROW_AO_B, ROW_AO_LN_G, ROW_AO_LN_B,
 ROW_O_B, ROW_O_LN_G, ROW_O_LN_B) = range(8)
N_VEC_ROWS = 8
VEC_W = max(3 * HIDDEN, INTERMEDIATE, HIDDEN)   # 96


# ----------------------------- helpers -----------------------------
def _ln(x, g, b):
    """f32 LayerNorm over the last dim; g/b broadcast over rows."""
    mean = jnp.mean(x, axis=-1, keepdims=True)
    var = jnp.mean(jnp.square(x - mean), axis=-1, keepdims=True)
    return (x - mean) * jax.lax.rsqrt(var + LN_EPS) * g + b


def _gelu_exact(x):
    """Exact erf GELU, matching transformers' default 'gelu'."""
    return 0.5 * x * (1.0 + jax.lax.erf(x * (1.0 / math.sqrt(2.0))))


# --------------- kernel 1: fused embedding add + LayerNorm ---------------
def _emb_add_ln_kernel(we_ref, pe_ref, te_ref, g_ref, b_ref, o_ref):
    x = (we_ref[...] + pe_ref[...] + te_ref[...]).astype(jnp.float32)
    o_ref[...] = _ln(x, g_ref[...], b_ref[...]).astype(o_ref.dtype)


def embed_add_layernorm(we, pe, te, gamma, beta):
    M, H = we.shape
    # No grid: full arrays live in VMEM for this single tiny block.
    return pl.pallas_call(
        _emb_add_ln_kernel,
        out_shape=jax.ShapeDtypeStruct((M, H), jnp.float32),
    )(we, pe, te, gamma, beta)


# --------------- kernel 2: fused all-layer encoder stack ---------------
def _encoder_stack_kernel(h0_ref, mask_ref, qkvw_ref, aow_ref, iw_ref, ow_ref,
                          vec_ref, out_ref, x_ref):
    """One grid step == one encoder layer over the whole flattened batch.

    h0:   (BS, H)  initial hidden states (read once, layer 0)
    mask: (BS, BS) additive (block-diag over batch + key padding)
    x_ref: VMEM scratch carrying activations across the layer grid axis.
    """
    layer = pl.program_id(0)

    @pl.when(layer == 0)
    def _():
        x_ref[...] = h0_ref[...]

    x = x_ref[...]                                  # (BS, H)
    mask = mask_ref[...]                            # (BS, BS)

    vec = vec_ref[0]                                # (8, VEC_W) packed small params
    qkv_b = vec[ROW_QKV_B:ROW_QKV_B + 1, :3 * HIDDEN]
    i_b   = vec[ROW_I_B:ROW_I_B + 1, :INTERMEDIATE]
    ao_b  = vec[ROW_AO_B:ROW_AO_B + 1, :HIDDEN]
    ao_g  = vec[ROW_AO_LN_G:ROW_AO_LN_G + 1, :HIDDEN]
    ao_bt = vec[ROW_AO_LN_B:ROW_AO_LN_B + 1, :HIDDEN]
    o_b   = vec[ROW_O_B:ROW_O_B + 1, :HIDDEN]
    o_g   = vec[ROW_O_LN_G:ROW_O_LN_G + 1, :HIDDEN]
    o_bt  = vec[ROW_O_LN_B:ROW_O_LN_B + 1, :HIDDEN]

    # ---- fused QKV projection over the whole batch: one (BS,H)@(H,3H) matmul ----
    qkv = jnp.dot(x, qkvw_ref[0],
                  preferred_element_type=jnp.float32) + qkv_b          # (BS, 3H)

    scale = 1.0 / math.sqrt(HEAD_DIM)

    def head_stack(base):
        # (NH, BS, DH): heads become a leading batch dim (no per-head matmuls).
        return jnp.stack(
            [qkv[:, base + h * HEAD_DIM: base + (h + 1) * HEAD_DIM]
             for h in range(N_HEADS)], axis=0)

    q = head_stack(0) * scale
    k = head_stack(HIDDEN)
    v = head_stack(2 * HIDDEN)

    # ---- attention: all heads & all batch rows in two batched MXU matmuls ----
    s = jnp.einsum('hqd,hkd->hqk', q, k,
                   preferred_element_type=jnp.float32) + mask          # (NH, BS, BS)
    s_max = jnp.max(s, axis=-1, keepdims=True)
    e = jnp.exp(s - s_max)
    p = e / jnp.sum(e, axis=-1, keepdims=True)                         # exact softmax
    ctx = jnp.einsum('hqk,hkd->hqd', p, v,
                     preferred_element_type=jnp.float32)               # (NH, BS, DH)
    ctx_m = jnp.concatenate([ctx[h] for h in range(N_HEADS)], axis=-1)  # (BS, H)

    # ---- attention output dense + residual + LayerNorm ----
    attn = jnp.dot(ctx_m, aow_ref[0],
                   preferred_element_type=jnp.float32) + ao_b
    h1 = _ln(attn + x, ao_g, ao_bt)

    # ---- feed-forward: intermediate GELU + output dense + residual + LN ----
    inter = _gelu_exact(jnp.dot(h1, iw_ref[0],
                                preferred_element_type=jnp.float32) + i_b)
    ffn = jnp.dot(inter, ow_ref[0],
                  preferred_element_type=jnp.float32) + o_b
    h2 = _ln(ffn + h1, o_g, o_bt)

    x_ref[...] = h2                      # carry to next layer (resident in VMEM)
    out_ref[0] = h2.astype(out_ref.dtype)


def encoder_stack(h0, mask_bd, qkv_w, ao_w, i_w, o_w, vecs):
    """h0: (BS, H); mask_bd: (BS, BS); weights stacked on a leading layer axis."""
    L = qkv_w.shape[0]
    BS, H = h0.shape
    I = i_w.shape[2]
    V = vecs.shape[2]

    def resident(shape):
        return pl.BlockSpec(shape, lambda l, n=len(shape): (0,) * n)

    def per_layer(shape):
        return pl.BlockSpec((1,) + shape, lambda l, n=len(shape): (l,) + (0,) * n)

    return pl.pallas_call(
        _encoder_stack_kernel,
        out_shape=jax.ShapeDtypeStruct((L, BS, H), jnp.float32),
        grid=(L,),
        in_specs=[
            resident((BS, H)),                 # h0 (constant block, fetched once)
            resident((BS, BS)),                # additive mask
            per_layer((H, 3 * H)),             # fused QKV weight
            per_layer((H, H)),                 # attn output weight
            per_layer((H, I)),                 # FFN intermediate weight
            per_layer((I, H)),                 # FFN output weight
            per_layer((N_VEC_ROWS, V)),        # packed biases + LN params
        ],
        out_specs=per_layer((BS, H)),          # per-layer hidden states
        scratch_shapes=[pltpu.VMEM((BS, H), jnp.float32)],   # resident activations
        compiler_params=pltpu.CompilerParams(
            dimension_semantics=("arbitrary",),    # layers carry state -> sequential
            vmem_limit_bytes=32 * 1024 * 1024),
    )(h0, mask_bd, qkv_w, ao_w, i_w, o_w, vecs)


# ----------------------------- parameters -----------------------------
def init_params(key):
    def nrm(k, shape):
        return jax.random.normal(k, shape, jnp.float32) * 0.02

    k_word, k_pos, k_tok, k_qkv, k_ao, k_i, k_o = jax.random.split(key, 7)

    vecs = jnp.zeros((N_LAYERS, N_VEC_ROWS, VEC_W), jnp.float32)
    vecs = vecs.at[:, ROW_AO_LN_G, :HIDDEN].set(1.0)   # LayerNorm gammas = 1
    vecs = vecs.at[:, ROW_O_LN_G, :HIDDEN].set(1.0)

    return {
        "word_emb": nrm(k_word, (VOCAB, HIDDEN)),
        "pos_emb": nrm(k_pos, (MAX_POS, HIDDEN)),
        "tok_emb": nrm(k_tok, (TYPE_VOCAB, HIDDEN)),
        "emb_ln_g": jnp.ones((1, HIDDEN), jnp.float32),
        "emb_ln_b": jnp.zeros((1, HIDDEN), jnp.float32),
        # per-layer weights stacked on a leading layer axis
        "qkv_w": nrm(k_qkv, (N_LAYERS, HIDDEN, 3 * HIDDEN)),
        "ao_w": nrm(k_ao, (N_LAYERS, HIDDEN, HIDDEN)),
        "i_w": nrm(k_i, (N_LAYERS, HIDDEN, INTERMEDIATE)),
        "o_w": nrm(k_o, (N_LAYERS, INTERMEDIATE, HIDDEN)),
        "vecs": vecs,
    }


# ----------------------------- forward pass -----------------------------
def pretrained_model_forward(params, input_ids, attention_mask=None,
                             token_type_ids=None):
    """Equivalent of ElectraModel(input_ids, attention_mask, token_type_ids)
    with output_hidden_states=True.  Returns (last_hidden_state, hidden_states).
    Dropout is a no-op in eval / frozen (requires_grad=False) mode."""
    B, S = input_ids.shape
    if attention_mask is None:
        attention_mask = jnp.ones((B, S), jnp.float32)
    if token_type_ids is None:
        token_type_ids = jnp.zeros((B, S), jnp.int32)
    BS = B * S

    # TODO(synk): embedding-table gathers have no clean small-Pallas equivalent; kept as XLA glue.
    we = params["word_emb"][input_ids].reshape(BS, HIDDEN)
    pe = jnp.broadcast_to(params["pos_emb"][:S][None], (B, S, HIDDEN)).reshape(BS, HIDDEN)
    te = params["tok_emb"][token_type_ids].reshape(BS, HIDDEN)

    # fused add + LayerNorm (one Pallas call, no intermediate HBM round-trip)
    h0 = embed_add_layernorm(we, pe, te, params["emb_ln_g"], params["emb_ln_b"])

    # additive attention mask over the flattened (B*S) token rows:
    #   block-diagonal over the batch (cross-sequence pairs fully suppressed) plus
    #   the HF-style -10000 * (1 - attention_mask) key-padding term.
    row_batch = jnp.repeat(jnp.arange(B, dtype=jnp.int32), S)             # (BS,)
    same_seq = row_batch[:, None] == row_batch[None, :]                   # (BS, BS)
    keep = attention_mask.astype(jnp.float32).reshape(BS)
    mask_bd = jnp.where(same_seq, 0.0, -1e9) + (1.0 - keep)[None, :] * -10000.0

    # single fused Pallas call for all encoder layers
    hs = encoder_stack(h0, mask_bd, params["qkv_w"], params["ao_w"],
                       params["i_w"], params["o_w"], params["vecs"])      # (L, BS, H)

    emb_out = h0.reshape(B, S, HIDDEN)
    layer_out = hs.reshape(N_LAYERS, B, S, HIDDEN)
    hidden_states = (emb_out,) + tuple(layer_out[l] for l in range(N_LAYERS))
    last_hidden_state = hidden_states[-1]
    return last_hidden_state, hidden_states


# ----------------------- pure-JAX reference (correctness) -----------------------
def _reference_forward(params, input_ids, attention_mask, token_type_ids):
    B, S = input_ids.shape
    we = params["word_emb"][input_ids]
    pe = params["pos_emb"][:S][None]
    te = params["tok_emb"][token_type_ids]
    h = _ln(we + pe + te, params["emb_ln_g"][0], params["emb_ln_b"][0])
    ext = (1.0 - attention_mask.astype(jnp.float32))[:, None, None, :] * -10000.0
    hidden = [h]
    for l in range(N_LAYERS):
        vec = params["vecs"][l]
        qkv = h @ params["qkv_w"][l] + vec[ROW_QKV_B, :3 * HIDDEN]
        q, k, v = jnp.split(qkv, 3, axis=-1)

        def split_heads(t):
            return t.reshape(B, S, N_HEADS, HEAD_DIM).transpose(0, 2, 1, 3)

        qh, kh, vh = split_heads(q), split_heads(k), split_heads(v)
        s = jnp.einsum('bhqd,bhkd->bhqk', qh, kh) / math.sqrt(HEAD_DIM) + ext
        p = jax.nn.softmax(s, axis=-1)
        c = jnp.einsum('bhqk,bhkd->bhqd', p, vh).transpose(0, 2, 1, 3).reshape(B, S, HIDDEN)
        attn = c @ params["ao_w"][l] + vec[ROW_AO_B, :HIDDEN]
        h1 = _ln(attn + h, vec[ROW_AO_LN_G, :HIDDEN], vec[ROW_AO_LN_B, :HIDDEN])
        inter = _gelu_exact(h1 @ params["i_w"][l] + vec[ROW_I_B, :INTERMEDIATE])
        ffn = inter @ params["o_w"][l] + vec[ROW_O_B, :HIDDEN]
        h = _ln(ffn + h1, vec[ROW_O_LN_G, :HIDDEN], vec[ROW_O_LN_B, :HIDDEN])
        hidden.append(h)
    return h, tuple(hidden)


# ----------------------------- main -----------------------------
if __name__ == "__main__":
    key = jax.random.PRNGKey(0)
    pkey, ikey = jax.random.split(key)

    params = init_params(pkey)

    B, S = 2, 8
    input_ids = jax.random.randint(ikey, (B, S), 0, VOCAB, dtype=jnp.int32)
    attention_mask = jnp.concatenate(
        [jnp.ones((B, S - 2), jnp.float32), jnp.zeros((B, 2), jnp.float32)],
        axis=1)
    token_type_ids = jnp.zeros((B, S), jnp.int32)

    forward = jax.jit(pretrained_model_forward)
    last_hidden, hidden_states = forward(
        params, input_ids, attention_mask=attention_mask,
        token_type_ids=token_type_ids)

    jax.block_until_ready(last_hidden)
    for hsx in hidden_states:
        jax.block_until_ready(hsx)

    assert last_hidden.shape == (B, S, HIDDEN)
    assert len(hidden_states) == N_LAYERS + 1
    assert bool(jnp.all(jnp.isfinite(last_hidden)))

    # correctness against a pure-JAX reference of the same synthetic model
    ref_last, ref_hidden = _reference_forward(params, input_ids,
                                              attention_mask, token_type_ids)
    assert bool(jnp.allclose(hidden_states[0], ref_hidden[0], atol=1e-4, rtol=1e-4))
    assert bool(jnp.allclose(last_hidden, ref_last, atol=1e-4, rtol=1e-4))

    print("KERNEL_OK")
</pallas_src>

<mosaic_0001>
module attributes {stable_mosaic.version = 11 : i64} {
  func.func @_emb_add_ln_kernel(%arg0: memref<16x32xf32, #tpu.memory_space<vmem>>, %arg1: memref<16x32xf32, #tpu.memory_space<vmem>>, %arg2: memref<16x32xf32, #tpu.memory_space<vmem>>, %arg3: memref<1x32xf32, #tpu.memory_space<vmem>>, %arg4: memref<1x32xf32, #tpu.memory_space<vmem>>, %arg5: memref<16x32xf32, #tpu.memory_space<vmem>>) attributes {dimension_semantics = [], scalar_prefetch = 0 : i64, scratch_operands = 0 : i64, tpu.core_type = #tpu.core_type<tc>} {
    %c0 = arith.constant 0 : index
    %c0_0 = arith.constant 0 : index
    %0 = vector.load %arg0[%c0, %c0_0] : memref<16x32xf32, #tpu.memory_space<vmem>>, vector<16x32xf32>
    %c0_1 = arith.constant 0 : index
    %c0_2 = arith.constant 0 : index
    %1 = vector.load %arg1[%c0_1, %c0_2] : memref<16x32xf32, #tpu.memory_space<vmem>>, vector<16x32xf32>
    %2 = arith.addf %0, %1 : vector<16x32xf32>
    %c0_3 = arith.constant 0 : index
    %c0_4 = arith.constant 0 : index
    %3 = vector.load %arg2[%c0_3, %c0_4] : memref<16x32xf32, #tpu.memory_space<vmem>>, vector<16x32xf32>
    %4 = arith.addf %2, %3 : vector<16x32xf32>
    %c0_5 = arith.constant 0 : index
    %c0_6 = arith.constant 0 : index
    %5 = vector.load %arg3[%c0_5, %c0_6] : memref<1x32xf32, #tpu.memory_space<vmem>>, vector<1x32xf32>
    %c0_7 = arith.constant 0 : index
    %c0_8 = arith.constant 0 : index
    %6 = vector.load %arg4[%c0_7, %c0_8] : memref<1x32xf32, #tpu.memory_space<vmem>>, vector<1x32xf32>
    %cst = arith.constant dense<0.000000e+00> : vector<16xf32>
    %7 = vector.multi_reduction <add>, %4, %cst [1] : vector<16x32xf32> to vector<16xf32>
    %8 = vector.shape_cast %7 : vector<16xf32> to vector<16x1xf32>
    %cst_9 = arith.constant 3.200000e+01 : f32
    %9 = vector.broadcast %cst_9 : f32 to vector<16x1xf32>
    %10 = arith.divf %8, %9 : vector<16x1xf32>
    %11 = vector.broadcast %10 : vector<16x1xf32> to vector<16x32xf32>
    %12 = arith.subf %4, %11 : vector<16x32xf32>
    %13 = arith.mulf %12, %12 : vector<16x32xf32>
    %cst_10 = arith.constant dense<0.000000e+00> : vector<16xf32>
    %14 = vector.multi_reduction <add>, %13, %cst_10 [1] : vector<16x32xf32> to vector<16xf32>
    %15 = vector.shape_cast %14 : vector<16xf32> to vector<16x1xf32>
    %cst_11 = arith.constant 3.200000e+01 : f32
    %16 = vector.broadcast %cst_11 : f32 to vector<16x1xf32>
    %17 = arith.divf %15, %16 : vector<16x1xf32>
    %18 = vector.broadcast %10 : vector<16x1xf32> to vector<16x32xf32>
    %19 = arith.subf %4, %18 : vector<16x32xf32>
    %cst_12 = arith.constant 9.99999996E-13 : f32
    %20 = vector.broadcast %cst_12 : f32 to vector<16x1xf32>
    %21 = arith.addf %17, %20 : vector<16x1xf32>
    %22 = math.rsqrt %21 : vector<16x1xf32>
    %23 = vector.broadcast %22 : vector<16x1xf32> to vector<16x32xf32>
    %24 = arith.mulf %19, %23 : vector<16x32xf32>
    %25 = vector.broadcast %5 : vector<1x32xf32> to vector<16x32xf32>
    %26 = arith.mulf %24, %25 : vector<16x32xf32>
    %27 = vector.broadcast %6 : vector<1x32xf32> to vector<16x32xf32>
    %28 = arith.addf %26, %27 : vector<16x32xf32>
    %c0_13 = arith.constant 0 : index
    %c0_14 = arith.constant 0 : index
    %29 = vector.load %arg5[%c0_13, %c0_14] : memref<16x32xf32, #tpu.memory_space<vmem>>, vector<16x32xf32>
    tpu.vector_store %arg5[%c0_13, %c0_14], %28 {strides = array<i32>} : memref<16x32xf32, #tpu.memory_space<vmem>>, vector<16x32xf32>,
    return
  }
}

module attributes {stable_mosaic.version = 11 : i64} {
  func.func @_encoder_stack_kernel(%arg0: i32, %arg1: memref<16x32xf32, #tpu.memory_space<vmem>>, %arg2: memref<16x16xf32, #tpu.memory_space<vmem>>, %arg3: memref<1x32x96xf32, #tpu.memory_space<vmem>>, %arg4: memref<1x32x32xf32, #tpu.memory_space<vmem>>, %arg5: memref<1x32x64xf32, #tpu.memory_space<vmem>>, %arg6: memref<1x64x32xf32, #tpu.memory_space<vmem>>, %arg7: memref<1x8x96xf32, #tpu.memory_space<vmem>>, %arg8: memref<1x16x32xf32, #tpu.memory_space<vmem>>, %arg9: memref<16x32xf32, #tpu.memory_space<vmem>>) attributes {dimension_semantics = [#tpu.dimension_semantics<arbitrary>], iteration_bounds = array<i64: 2>, scalar_prefetch = 0 : i64, scratch_operands = 1 : i64, tpu.core_type = #tpu.core_type<tc>, window_params = [{pipeline_mode = #tpu.pipeline_mode<synchronous>, transform_indices = @transform_0, window_bounds = array<i64: 16, 32>}, {pipeline_mode = #tpu.pipeline_mode<synchronous>, transform_indices = @transform_1, window_bounds = array<i64: 16, 16>}, {transform_indices = @transform_2, window_bounds = array<i64: 1, 32, 96>}, {transform_indices = @transform_3, window_bounds = array<i64: 1, 32, 32>}, {transform_indices = @transform_4, window_bounds = array<i64: 1, 32, 64>}, {transform_indices = @transform_5, window_bounds = array<i64: 1, 64, 32>}, {transform_indices = @transform_6, window_bounds = array<i64: 1, 8, 96>}, {transform_indices = @transform_7, window_bounds = array<i64: 1, 16, 32>}]} {
    %c0_i32 = arith.constant 0 : i32
    %0 = arith.cmpi eq, %arg0, %c0_i32 : i32
    %1 = arith.extui %0 : i1 to i32
    %c0_i32_0 = arith.constant 0 : i32
    %2 = arith.cmpi ne, %1, %c0_i32_0 : i32
    scf.if %2 {
      %c0_45 = arith.constant 0 : index
      %c0_46 = arith.constant 0 : index
      %145 = vector.load %arg1[%c0_45, %c0_46] : memref<16x32xf32, #tpu.memory_space<vmem>>, vector<16x32xf32>
      %c0_47 = arith.constant 0 : index
      %c0_48 = arith.constant 0 : index
      %146 = vector.load %arg9[%c0_47, %c0_48] : memref<16x32xf32, #tpu.memory_space<vmem>>, vector<16x32xf32>
      tpu.vector_store %arg9[%c0_47, %c0_48], %145 {strides = array<i32>} : memref<16x32xf32, #tpu.memory_space<vmem>>, vector<16x32xf32>,
    } else {
    }
    %c0 = arith.constant 0 : index
    %c0_1 = arith.constant 0 : index
    %3 = vector.load %arg9[%c0, %c0_1] : memref<16x32xf32, #tpu.memory_space<vmem>>, vector<16x32xf32>
    %c0_2 = arith.constant 0 : index
    %c0_3 = arith.constant 0 : index
    %4 = vector.load %arg2[%c0_2, %c0_3] : memref<16x16xf32, #tpu.memory_space<vmem>>, vector<16x16xf32>
    %c0_4 = arith.constant 0 : index
    %c0_5 = arith.constant 0 : index
    %c0_6 = arith.constant 0 : index
    %5 = vector.load %arg7[%c0_4, %c0_5, %c0_6] : memref<1x8x96xf32, #tpu.memory_space<vmem>>, vector<1x8x96xf32>
    %6 = vector.shape_cast %5 : vector<1x8x96xf32> to vector<8x96xf32>
    %7 = vector.extract_strided_slice %6 {offsets = [0, 0], sizes = [1, 96], strides = [1, 1]} : vector<8x96xf32> to vector<1x96xf32>
    %8 = vector.extract_strided_slice %6 {offsets = [1, 0], sizes = [1, 64], strides = [1, 1]} : vector<8x96xf32> to vector<1x64xf32>
    %9 = vector.extract_strided_slice %6 {offsets = [2, 0], sizes = [1, 32], strides = [1, 1]} : vector<8x96xf32> to vector<1x32xf32>
    %10 = vector.extract_strided_slice %6 {offsets = [3, 0], sizes = [1, 32], strides = [1, 1]} : vector<8x96xf32> to vector<1x32xf32>
    %11 = vector.extract_strided_slice %6 {offsets = [4, 0], sizes = [1, 32], strides = [1, 1]} : vector<8x96xf32> to vector<1x32xf32>
    %12 = vector.extract_strided_slice %6 {offsets = [5, 0], sizes = [1, 32], strides = [1, 1]} : vector<8x96xf32> to vector<1x32xf32>
    %13 = vector.extract_strided_slice %6 {offsets = [6, 0], sizes = [1, 32], strides = [1, 1]} : vector<8x96xf32> to vector<1x32xf32>
    %14 = vector.extract_strided_slice %6 {offsets = [7, 0], sizes = [1, 32], strides = [1, 1]} : vector<8x96xf32> to vector<1x32xf32>
    %c0_7 = arith.constant 0 : index
    %c0_8 = arith.constant 0 : index
    %c0_9 = arith.constant 0 : index
    %15 = vector.load %arg3[%c0_7, %c0_8, %c0_9] : memref<1x32x96xf32, #tpu.memory_space<vmem>>, vector<1x32x96xf32>
    %16 = vector.shape_cast %15 : vector<1x32x96xf32> to vector<32x96xf32>
    %cst = arith.constant dense<0.000000e+00> : vector<16x96xf32>
    %17 = tpu.matmul %3, %16, %cst {dimension_numbers = #tpu.dot_dimension_numbers<[1], [0], [0], [1], [0, 0, 1, 1], [], []>} : vector<16x32xf32>, vector<32x96xf32>, vector<16x96xf32> -> vector<16x96xf32>
    %18 = vector.broadcast %7 : vector<1x96xf32> to vector<16x96xf32>
    %19 = arith.addf %17, %18 : vector<16x96xf32>
    %20 = vector.extract_strided_slice %19 {offsets = [0, 0], sizes = [16, 8], strides = [1, 1]} : vector<16x96xf32> to vector<16x8xf32>
    %21 = vector.extract_strided_slice %19 {offsets = [0, 8], sizes = [16, 8], strides = [1, 1]} : vector<16x96xf32> to vector<16x8xf32>
    %22 = vector.extract_strided_slice %19 {offsets = [0, 16], sizes = [16, 8], strides = [1, 1]} : vector<16x96xf32> to vector<16x8xf32>
    %23 = vector.extract_strided_slice %19 {offsets = [0, 24], sizes = [16, 8], strides = [1, 1]} : vector<16x96xf32> to vector<16x8xf32>
    %24 = vector.shape_cast %20 : vector<16x8xf32> to vector<1x16x8xf32>
    %25 = vector.shape_cast %21 : vector<16x8xf32> to vector<1x16x8xf32>
    %26 = vector.shape_cast %22 : vector<16x8xf32> to vector<1x16x8xf32>
    %27 = vector.shape_cast %23 : vector<16x8xf32> to vector<1x16x8xf32>
    %28 = tpu.concatenate %24, %25, %26, %27 in 0 : vector<1x16x8xf32>, vector<1x16x8xf32>, vector<1x16x8xf32>, vector<1x16x8xf32> -> vector<4x16x8xf32>
    %cst_10 = arith.constant 0.353553385 : f32
    %29 = vector.broadcast %cst_10 : f32 to vector<4x16x8xf32>
    %30 = arith.mulf %28, %29 : vector<4x16x8xf32>
    %31 = vector.extract_strided_slice %19 {offsets = [0, 32], sizes = [16, 8], strides = [1, 1]} : vector<16x96xf32> to vector<16x8xf32>
    %32 = vector.extract_strided_slice %19 {offsets = [0, 40], sizes = [16, 8], strides = [1, 1]} : vector<16x96xf32> to vector<16x8xf32>
    %33 = vector.extract_strided_slice %19 {offsets = [0, 48], sizes = [16, 8], strides = [1, 1]} : vector<16x96xf32> to vector<16x8xf32>
    %34 = vector.extract_strided_slice %19 {offsets = [0, 56], sizes = [16, 8], strides = [1, 1]} : vector<16x96xf32> to vector<16x8xf32>
    %35 = vector.shape_cast %31 : vector<16x8xf32> to vector<1x16x8xf32>
    %36 = vector.shape_cast %32 : vector<16x8xf32> to vector<1x16x8xf32>
    %37 = vector.shape_cast %33 : vector<16x8xf32> to vector<1x16x8xf32>
    %38 = vector.shape_cast %34 : vector<16x8xf32> to vector<1x16x8xf32>
    %39 = tpu.concatenate %35, %36, %37, %38 in 0 : vector<1x16x8xf32>, vector<1x16x8xf32>, vector<1x16x8xf32>, vector<1x16x8xf32> -> vector<4x16x8xf32>
    %40 = vector.extract_strided_slice %19 {offsets = [0, 64], sizes = [16, 8], strides = [1, 1]} : vector<16x96xf32> to vector<16x8xf32>
    %41 = vector.extract_strided_slice %19 {offsets = [0, 72], sizes = [16, 8], strides = [1, 1]} : vector<16x96xf32> to vector<16x8xf32>
    %42 = vector.extract_strided_slice %19 {offsets = [0, 80], sizes = [16, 8], strides = [1, 1]} : vector<16x96xf32> to vector<16x8xf32>
    %43 = vector.extract_strided_slice %19 {offsets = [0, 88], sizes = [16, 8], strides = [1, 1]} : vector<16x96xf32> to vector<16x8xf32>
    %44 = vector.shape_cast %40 : vector<16x8xf32> to vector<1x16x8xf32>
    %45 = vector.shape_cast %41 : vector<16x8xf32> to vector<1x16x8xf32>
    %46 = vector.shape_cast %42 : vector<16x8xf32> to vector<1x16x8xf32>
    %47 = vector.shape_cast %43 : vector<16x8xf32> to vector<1x16x8xf32>
    %48 = tpu.concatenate %44, %45, %46, %47 in 0 : vector<1x16x8xf32>, vector<1x16x8xf32>, vector<1x16x8xf32>, vector<1x16x8xf32> -> vector<4x16x8xf32>
    "tpu.trace_start"() <{level = 10 : i32, message = "hqd,hkd->hqk"}> : () -> ()
    %cst_11 = arith.constant dense<0.000000e+00> : vector<4x16x16xf32>
    %49 = tpu.matmul %30, %39, %cst_11 {dimension_numbers = #tpu.dot_dimension_numbers<[2], [2], [1], [1], [0, 0, 0, 1, 1, 1], [0], [0]>} : vector<4x16x8xf32>, vector<4x16x8xf32>, vector<4x16x16xf32> -> vector<4x16x16xf32>
    "tpu.trace_stop"() : () -> ()
    %50 = vector.shape_cast %4 : vector<16x16xf32> to vector<1x16x16xf32>
    %51 = vector.broadcast %50 : vector<1x16x16xf32> to vector<4x16x16xf32>
    %52 = arith.addf %49, %51 : vector<4x16x16xf32>
    %cst_12 = arith.constant dense<0xFF800000> : vector<4x16xf32>
    %53 = vector.multi_reduction <maximumf>, %52, %cst_12 [2] : vector<4x16x16xf32> to vector<4x16xf32>
    %54 = vector.shape_cast %53 : vector<4x16xf32> to vector<4x16x1xf32>
    %55 = vector.broadcast %54 : vector<4x16x1xf32> to vector<4x16x16xf32>
    %56 = arith.subf %52, %55 : vector<4x16x16xf32>
    %57 = math.exp %56 : vector<4x16x16xf32>
    %cst_13 = arith.constant dense<0.000000e+00> : vector<4x16xf32>
    %58 = vector.multi_reduction <add>, %57, %cst_13 [2] : vector<4x16x16xf32> to vector<4x16xf32>
    %59 = vector.shape_cast %58 : vector<4x16xf32> to vector<4x16x1xf32>
    %60 = vector.broadcast %59 : vector<4x16x1xf32> to vector<4x16x16xf32>
    %61 = arith.divf %57, %60 : vector<4x16x16xf32>
    "tpu.trace_start"() <{level = 10 : i32, message = "hqk,hkd->hqd"}> : () -> ()
    %cst_14 = arith.constant dense<0.000000e+00> : vector<4x16x8xf32>
    %62 = tpu.matmul %61, %48, %cst_14 {dimension_numbers = #tpu.dot_dimension_numbers<[2], [1], [1], [2], [0, 0, 0, 1, 1, 2], [0], [0]>} : vector<4x16x16xf32>, vector<4x16x8xf32>, vector<4x16x8xf32> -> vector<4x16x8xf32>
    "tpu.trace_stop"() : () -> ()
    %63 = vector.extract_strided_slice %62 {offsets = [0, 0, 0], sizes = [1, 16, 8], strides = [1, 1, 1]} : vector<4x16x8xf32> to vector<1x16x8xf32>
    %64 = vector.shape_cast %63 : vector<1x16x8xf32> to vector<16x8xf32>
    %65 = vector.extract_strided_slice %62 {offsets = [1, 0, 0], sizes = [1, 16, 8], strides = [1, 1, 1]} : vector<4x16x8xf32> to vector<1x16x8xf32>
    %66 = vector.shape_cast %65 : vector<1x16x8xf32> to vector<16x8xf32>
    %67 = vector.extract_strided_slice %62 {offsets = [2, 0, 0], sizes = [1, 16, 8], strides = [1, 1, 1]} : vector<4x16x8xf32> to vector<1x16x8xf32>
    %68 = vector.shape_cast %67 : vector<1x16x8xf32> to vector<16x8xf32>
    %69 = vector.extract_strided_slice %62 {offsets = [3, 0, 0], sizes = [1, 16, 8], strides = [1, 1, 1]} : vector<4x16x8xf32> to vector<1x16x8xf32>
    %70 = vector.shape_cast %69 : vector<1x16x8xf32> to vector<16x8xf32>
    %71 = tpu.concatenate %64, %66, %68, %70 in 1 : vector<16x8xf32>, vector<16x8xf32>, vector<16x8xf32>, vector<16x8xf32> -> vector<16x32xf32>
    %c0_15 = arith.constant 0 : index
    %c0_16 = arith.constant 0 : index
    %c0_17 = arith.constant 0 : index
    %72 = vector.load %arg4[%c0_15, %c0_16, %c0_17] : memref<1x32x32xf32, #tpu.memory_space<vmem>>, vector<1x32x32xf32>
    %73 = vector.shape_cast %72 : vector<1x32x32xf32> to vector<32x32xf32>
    %cst_18 = arith.constant dense<0.000000e+00> : vector<16x32xf32>
    %74 = tpu.matmul %71, %73, %cst_18 {dimension_numbers = #tpu.dot_dimension_numbers<[1], [0], [0], [1], [0, 0, 1, 1], [], []>} : vector<16x32xf32>, vector<32x32xf32>, vector<16x32xf32> -> vector<16x32xf32>
    %75 = vector.broadcast %9 : vector<1x32xf32> to vector<16x32xf32>
    %76 = arith.addf %74, %75 : vector<16x32xf32>
    %77 = arith.addf %76, %3 : vector<16x32xf32>
    %cst_19 = arith.constant dense<0.000000e+00> : vector<16xf32>
    %78 = vector.multi_reduction <add>, %77, %cst_19 [1] : vector<16x32xf32> to vector<16xf32>
    %79 = vector.shape_cast %78 : vector<16xf32> to vector<16x1xf32>
    %cst_20 = arith.constant 3.200000e+01 : f32
    %80 = vector.broadcast %cst_20 : f32 to vector<16x1xf32>
    %81 = arith.divf %79, %80 : vector<16x1xf32>
    %82 = vector.broadcast %81 : vector<16x1xf32> to vector<16x32xf32>
    %83 = arith.subf %77, %82 : vector<16x32xf32>
    %84 = arith.mulf %83, %83 : vector<16x32xf32>
    %cst_21 = arith.constant dense<0.000000e+00> : vector<16xf32>
    %85 = vector.multi_reduction <add>, %84, %cst_21 [1] : vector<16x32xf32> to vector<16xf32>
    %86 = vector.shape_cast %85 : vector<16xf32> to vector<16x1xf32>
    %cst_22 = arith.constant 3.200000e+01 : f32
    %87 = vector.broadcast %cst_22 : f32 to vector<16x1xf32>
    %88 = arith.divf %86, %87 : vector<16x1xf32>
    %89 = vector.broadcast %81 : vector<16x1xf32> to vector<16x32xf32>
    %90 = arith.subf %77, %89 : vector<16x32xf32>
    %cst_23 = arith.constant 9.99999996E-13 : f32
    %91 = vector.broadcast %cst_23 : f32 to vector<16x1xf32>
    %92 = arith.addf %88, %91 : vector<16x1xf32>
    %93 = math.rsqrt %92 : vector<16x1xf32>
    %94 = vector.broadcast %93 : vector<16x1xf32> to vector<16x32xf32>
    %95 = arith.mulf %90, %94 : vector<16x32xf32>
    %96 = vector.broadcast %10 : vector<1x32xf32> to vector<16x32xf32>
    %97 = arith.mulf %95, %96 : vector<16x32xf32>
    %98 = vector.broadcast %11 : vector<1x32xf32> to vector<16x32xf32>
    %99 = arith.addf %97, %98 : vector<16x32xf32>
    %c0_24 = arith.constant 0 : index
    %c0_25 = arith.constant 0 : index
    %c0_26 = arith.constant 0 : index
    %100 = vector.load %arg5[%c0_24, %c0_25, %c0_26] : memref<1x32x64xf32, #tpu.memory_space<vmem>>, vector<1x32x64xf32>
    %101 = vector.shape_cast %100 : vector<1x32x64xf32> to vector<32x64xf32>
    %cst_27 = arith.constant dense<0.000000e+00> : vector<16x64xf32>
    %102 = tpu.matmul %99, %101, %cst_27 {dimension_numbers = #tpu.dot_dimension_numbers<[1], [0], [0], [1], [0, 0, 1, 1], [], []>} : vector<16x32xf32>, vector<32x64xf32>, vector<16x64xf32> -> vector<16x64xf32>
    %103 = vector.broadcast %8 : vector<1x64xf32> to vector<16x64xf32>
    %104 = arith.addf %102, %103 : vector<16x64xf32>
    %cst_28 = arith.constant 5.000000e-01 : f32
    %105 = vector.broadcast %cst_28 : f32 to vector<16x64xf32>
    %106 = arith.mulf %105, %104 : vector<16x64xf32>
    %cst_29 = arith.constant 0.707106769 : f32
    %107 = vector.broadcast %cst_29 : f32 to vector<16x64xf32>
    %108 = arith.mulf %104, %107 : vector<16x64xf32>
    %109 = math.erf %108 : vector<16x64xf32>
    %cst_30 = arith.constant 1.000000e+00 : f32
    %110 = vector.broadcast %cst_30 : f32 to vector<16x64xf32>
    %111 = arith.addf %110, %109 : vector<16x64xf32>
    %112 = arith.mulf %106, %111 : vector<16x64xf32>
    %c0_31 = arith.constant 0 : index
    %c0_32 = arith.constant 0 : index
    %c0_33 = arith.constant 0 : index
    %113 = vector.load %arg6[%c0_31, %c0_32, %c0_33] : memref<1x64x32xf32, #tpu.memory_space<vmem>>, vector<1x64x32xf32>
    %114 = vector.shape_cast %113 : vector<1x64x32xf32> to vector<64x32xf32>
    %cst_34 = arith.constant dense<0.000000e+00> : vector<16x32xf32>
    %115 = tpu.matmul %112, %114, %cst_34 {dimension_numbers = #tpu.dot_dimension_numbers<[1], [0], [0], [1], [0, 0, 1, 1], [], []>} : vector<16x64xf32>, vector<64x32xf32>, vector<16x32xf32> -> vector<16x32xf32>
    %116 = vector.broadcast %12 : vector<1x32xf32> to vector<16x32xf32>
    %117 = arith.addf %115, %116 : vector<16x32xf32>
    %118 = arith.addf %117, %99 : vector<16x32xf32>
    %cst_35 = arith.constant dense<0.000000e+00> : vector<16xf32>
    %119 = vector.multi_reduction <add>, %118, %cst_35 [1] : vector<16x32xf32> to vector<16xf32>
    %120 = vector.shape_cast %119 : vector<16xf32> to vector<16x1xf32>
    %cst_36 = arith.constant 3.200000e+01 : f32
    %121 = vector.broadcast %cst_36 : f32 to vector<16x1xf32>
    %122 = arith.divf %120, %121 : vector<16x1xf32>
    %123 = vector.broadcast %122 : vector<16x1xf32> to vector<16x32xf32>
    %124 = arith.subf %118, %123 : vector<16x32xf32>
    %125 = arith.mulf %124, %124 : vector<16x32xf32>
    %cst_37 = arith.constant dense<0.000000e+00> : vector<16xf32>
    %126 = vector.multi_reduction <add>, %125, %cst_37 [1] : vector<16x32xf32> to vector<16xf32>
    %127 = vector.shape_cast %126 : vector<16xf32> to vector<16x1xf32>
    %cst_38 = arith.constant 3.200000e+01 : f32
    %128 = vector.broadcast %cst_38 : f32 to vector<16x1xf32>
    %129 = arith.divf %127, %128 : vector<16x1xf32>
    %130 = vector.broadcast %122 : vector<16x1xf32> to vector<16x32xf32>
    %131 = arith.subf %118, %130 : vector<16x32xf32>
    %cst_39 = arith.constant 9.99999996E-13 : f32
    %132 = vector.broadcast %cst_39 : f32 to vector<16x1xf32>
    %133 = arith.addf %129, %132 : vector<16x1xf32>
    %134 = math.rsqrt %133 : vector<16x1xf32>
    %135 = vector.broadcast %134 : vector<16x1xf32> to vector<16x32xf32>
    %136 = arith.mulf %131, %135 : vector<16x32xf32>
    %137 = vector.broadcast %13 : vector<1x32xf32> to vector<16x32xf32>
    %138 = arith.mulf %136, %137 : vector<16x32xf32>
    %139 = vector.broadcast %14 : vector<1x32xf32> to vector<16x32xf32>
    %140 = arith.addf %138, %139 : vector<16x32xf32>
    %c0_40 = arith.constant 0 : index
    %c0_41 = arith.constant 0 : index
    %141 = vector.load %arg9[%c0_40, %c0_41] : memref<16x32xf32, #tpu.memory_space<vmem>>, vector<16x32xf32>
    tpu.vector_store %arg9[%c0_40, %c0_41], %140 {strides = array<i32>} : memref<16x32xf32, #tpu.memory_space<vmem>>, vector<16x32xf32>,
    %c0_42 = arith.constant 0 : index
    %c0_43 = arith.constant 0 : index
    %c0_44 = arith.constant 0 : index
    %142 = vector.load %arg8[%c0_42, %c0_43, %c0_44] : memref<1x16x32xf32, #tpu.memory_space<vmem>>, vector<1x16x32xf32>
    %143 = vector.shape_cast %142 : vector<1x16x32xf32> to vector<16x32xf32>
    %144 = vector.shape_cast %140 : vector<16x32xf32> to vector<1x16x32xf32>
    tpu.vector_store %arg8[%c0_42, %c0_43, %c0_44], %144 {strides = array<i32>} : memref<1x16x32xf32, #tpu.memory_space<vmem>>, vector<1x16x32xf32>,
    return
  }
  func.func @transform_0(%arg0: i32) -> (i32, i32) {
    %c0_i32 = arith.constant 0 : i32
    %c0_i32_0 = arith.constant 0 : i32
    %c0_i32_1 = arith.constant 0 : i32
    return %c0_i32, %c0_i32_0 : i32, i32
  }
  func.func @transform_1(%arg0: i32) -> (i32, i32) {
    %c0_i32 = arith.constant 0 : i32
    %c0_i32_0 = arith.constant 0 : i32
    %c0_i32_1 = arith.constant 0 : i32
    return %c0_i32, %c0_i32_0 : i32, i32
  }
  func.func @transform_2(%arg0: i32) -> (i32, i32, i32) {
    %c0_i32 = arith.constant 0 : i32
    %c0_i32_0 = arith.constant 0 : i32
    %c0_i32_1 = arith.constant 0 : i32
    return %arg0, %c0_i32, %c0_i32_0 : i32, i32, i32
  }
  func.func @transform_3(%arg0: i32) -> (i32, i32, i32) {
    %c0_i32 = arith.constant 0 : i32
    %c0_i32_0 = arith.constant 0 : i32
    %c0_i32_1 = arith.constant 0 : i32
    return %arg0, %c0_i32, %c0_i32_0 : i32, i32, i32
  }
  func.func @transform_4(%arg0: i32) -> (i32, i32, i32) {
    %c0_i32 = arith.constant 0 : i32
    %c0_i32_0 = arith.constant 0 : i32
    %c0_i32_1 = arith.constant 0 : i32
    return %arg0, %c0_i32, %c0_i32_0 : i32, i32, i32
  }
  func.func @transform_5(%arg0: i32) -> (i32, i32, i32) {
    %c0_i32 = arith.constant 0 : i32
    %c0_i32_0 = arith.constant 0 : i32
    %c0_i32_1 = arith.constant 0 : i32
    return %arg0, %c0_i32, %c0_i32_0 : i32, i32, i32
  }
  func.func @transform_6(%arg0: i32) -> (i32, i32, i32) {
    %c0_i32 = arith.constant 0 : i32
    %c0_i32_0 = arith.constant 0 : i32
    %c0_i32_1 = arith.constant 0 : i32
    return %arg0, %c0_i32, %c0_i32_0 : i32, i32, i32
  }
  func.func @transform_7(%arg0: i32) -> (i32, i32, i32) {
    %c0_i32 = arith.constant 0 : i32
    %c0_i32_0 = arith.constant 0 : i32
    %c0_i32_1 = arith.constant 0 : i32
    return %arg0, %c0_i32, %c0_i32_0 : i32, i32, i32
  }
}

</mosaic_0001>

<bundles_post_ra>
// kernel: pretrained_model_forward.2
= control target key start
LH: loop header
LB: loop body
LE: loop exit
PB: predicated region body
PF: predicated region fallthrough
CT: control target
= control target key end

     0   :  { %vm32_vm0 = vcmask 261120   ;;  %s154_s0 = inlined_call_operand.vmem [shape: f32[16,32], index: 0, kind: input, shape index: {}]   ;;  %s155_s1 = inlined_call_operand.vmem [shape: f32[16,32], index: 1, kind: input, shape index: {}]   ;;  %s156_s2 = inlined_call_operand.vmem [shape: f32[16,32], index: 2, kind: input, shape index: {}]   ;;  %s157_s3 = inlined_call_operand.vmem [shape: f32[1,32], index: 3, kind: input, shape index: {}]   ;;  %s158_s4 = inlined_call_operand.vmem [shape: f32[1,32], index: 4, kind: input, shape index: {}]   ;;  %s159_s5 = inlined_call_operand.vmem [shape: f32[16,32], index: 5, kind: output, shape index: {}]  }
   0x1   :  { %v20_v0 = vld [vmem:[%s154_s0] sm:$0xff]  ;;  %v21_v4 = vld [vmem:[%s154_s0 + $0x8] sm:$0xff] }
   0x2   :  { %v22_v1 = vld [vmem:[%s155_s1] sm:$0xff]  ;;  %v23_v5 = vld [vmem:[%s155_s1 + $0x8] sm:$0xff] }
   0x3   :  { %v26_v2 = vld [vmem:[%s156_s2] sm:$0xff]  ;;  %v24_v3 = vadd.f32 %v22_v1, %v20_v0  ;;  %v27_v6 = vld [vmem:[%s156_s2 + $0x8] sm:$0xff]  ;;  %v25_v7 = vadd.f32 %v23_v5, %v21_v4 }
   0x4   :  { %v82_v29 = vld [vmem:[%s157_s3] ss:$0 sm:$0xff] }
   0x5   :  { %v28_v8 = vadd.f32 %v26_v2, %v24_v3  ;;  %v29_v9 = vadd.f32 %v27_v6, %v25_v7  ;;  %v83_v31 = vld [vmem:[%s158_s4] ss:$0 sm:$0xff] }
   0x7   :  { %v33_v10 = vsel %vm32_vm0, %v28_v8, 0.0  ;;  %v36_v11 = vsel %vm32_vm0, %v29_v9, 0.0 }
   0x8   :  { %34 = vadd.xlane.f32.xlu0 %v33_v10 }
   0xc   :  { %37 = vadd.xlane.f32.xlu0 %v36_v11 }
  0x91   :  { %v35_v12 = vpop.xlane.xlu0 %34 }
  0x92   :  { %v40_v13 = vmul.f32 0.03125, %v35_v12 }
  0x94   :  { %v42_v14 = vsub.f32 %v28_v8, %v40_v13 }
  0x95   :  { %v38_v15 = vpop.xlane.xlu0 %37 }
  0x96   :  { %v41_v16 = vmul.f32 0.03125, %v38_v15  ;;  %v44_v17 = vmul.f32 %v42_v14, %v42_v14 }
  0x98   :  { %v43_v18 = vsub.f32 %v29_v9, %v41_v16  ;;  %v46_v19 = vsel %vm32_vm0, %v44_v17, 0.0 }
  0x99   :  { %47 = vadd.xlane.f32.xlu1 %v46_v19 }
  0x9a   :  { %v45_v20 = vmul.f32 %v43_v18, %v43_v18 }
  0x9c   :  { %v49_v21 = vsel %vm32_vm0, %v45_v20, 0.0 }
  0x9d   :  { %50 = vadd.xlane.f32.xlu1 %v49_v21 }
 0x122   :  { %v48_v22 = vpop.xlane.xlu1 %47 }
 0x123   :  { %v52_v23 = vmul.f32 0.03125, %v48_v22 }
 0x125   :  { %v54_v24 = vadd.f32 1e-12, %v52_v23 }
 0x126   :  { %v51_v25 = vpop.xlane.xlu1 %50 }
 0x127   :  { %84 = vrsqrt.f32 %v54_v24  ;;  %v53_v26 = vmul.f32 0.03125, %v51_v25 }
 0x129   :  { %v55_v27 = vadd.f32 1e-12, %v53_v26 }
 0x12b   :  { %86 = vrsqrt.f32 %v55_v27 }
 0x134   :  { %v85_v28 = vpop.eup %84 }
 0x135   :  { %v58_v30 = vmul.f32 %v85_v28, %v42_v14 }
 0x137   :  { %v66_v32 = vmul.f32 %v82_v29, %v58_v30 }
 0x138   :  { %v87_v33 = vpop.eup %86 }
 0x139   :  { %v74_v34 = vadd.f32 %v83_v31, %v66_v32  ;;  %v59_v35 = vmul.f32 %v87_v33, %v43_v18 }
 0x13b   :  { %76 = vst.msk [vmem:[%s159_s5] sm:$0xff] %vm32_vm0, %v74_v34  ;;  %v67_v36 = vmul.f32 %v82_v29, %v59_v35 }
 0x13d   :  { %v75_v37 = vadd.f32 %v83_v31, %v67_v36 }
 0x13f   :  { %77 = vst.msk [vmem:[%s159_s5 + $0x8] sm:$0xff] %vm32_vm0, %v75_v37 }

// kernel: pretrained_model_forward.3
= control target key start
LH: loop header
LB: loop body
LE: loop exit
PB: predicated region body
PF: predicated region fallthrough
CT: control target
= control target key end

     0   :  { %s2123_s24 = smov 0   ;;  %s2350_s0 = inlined_call_operand.vmem [shape: f32[16,32], index: 0, kind: input, shape index: {}]   ;;  %s2351_s1 = inlined_call_operand.vmem [shape: f32[16,16], index: 1, kind: input, shape index: {}]   ;;  %s2352_s2 = inlined_call_operand.vmem [shape: f32[2,32,96], index: 2, kind: input, shape index: {}]   ;;  %s2353_s3 = inlined_call_operand.vmem [shape: f32[2,32,32], index: 3, kind: input, shape index: {}]   ;;  %s2354_s4 = inlined_call_operand.vmem [shape: f32[2,32,64], index: 4, kind: input, shape index: {}]   ;;  %s2355_s5 = inlined_call_operand.vmem [shape: f32[2,64,32], index: 5, kind: input, shape index: {}]   ;;  %s2356_s6 = inlined_call_operand.vmem [shape: f32[2,8,96], index: 6, kind: input, shape index: {}]   ;;  %s2357_s7 = inlined_call_operand.vmem [shape: f32[2,16,32], index: 7, kind: output, shape index: {}]  }
   0x1 LB: > { %s1783_s25 = sadd.s32 4294967295, %s2073_s24   ;;  %p1787_p0 = scmp.ge.s32.totalorder %s2073_s24, 1  ;;  %s2073_s24 = sphi %s2123_s24, %s17_s24  }
   0x2   : > { %p276_p1 = scmp.lt.s32.totalorder %s2073_s24, 3 }
   0x4   : > { %p277_p2 = pnand %p1787_p0, %p276_p1 }
   0x5   : > { %p327_p3 = scmp.lt.s32.totalorder (!%p277_p2), %s1783_s25, 1  ;;  %p1799_p4 = scmp.ne.s32.totalorder (!%p277_p2), %s1783_s25, 0 }
   0x6   : > { %280 = sbr.rel (%p277_p2) target bundleno = 2536 (0x9e8), region = 48 }
   0xb   : > { %s328_s26 = scalar_select %p327_p3, %s1783_s25, 1 }
   0xd   : > { %s1834_s27 = sshll.u32 %s328_s26, 5  ;;  %s1837_s28 = sshll.u32 %s328_s26, 6 }
   0xe   : > { %s331_s8 = scalar_lea.vmem %s2352_s2, %s1834_s27  ;;  %s2137_s11 = scalar_lea.vmem %s2353_s3, %s1834_s27 }
   0xf   : > { %s2142_s14 = scalar_lea.vmem %s2354_s4, %s1834_s27  ;;  %s2147_s17 = scalar_lea.vmem %s2355_s5, %s1837_s28 }
  0x10   : > { %s1796_s18 = sshll.u32 %s328_s26, 3  ;;  %s1838_s19 = sshll.u32 %s328_s26, 4 }
  0x11   : > { %s350_s22 = scalar_lea.vmem %s2356_s6, %s1796_s18  ;;  %s2155_s30 = scalar_lea.vmem %s2357_s7, %s1838_s19 }
  0x12   : > { %359 = sbr.rel (%p1799_p4) target bundleno = 25 (0x19), region = 52 }
  0x17   : > { %v360_v0 = vld [vmem:[%s2350_s0] sm:$0xff]  ;;  %vm362_vm0 = vcmask 261120   ;;  %v361_v1 = vld [vmem:[%s2350_s0 + $0x8] sm:$0xff] }
  0x18   : > { %363 = vst.msk [vmem:[#allocation2] sm:$0xff] %vm362_vm0, %v360_v0  ;;  %364 = vst.msk [vmem:[#allocation2 + $0x8] sm:$0xff] %vm362_vm0, %v361_v1 }
  0x19 PF: > { %v373_v2 = vld [vmem:[%s331_s8 + $0x18] sm:$0xff]  ;;  %v372_v3 = vld [vmem:[%s331_s8 + $0x10] sm:$0xff]  ;;  %vm378_vm1 = vcmask 261120   ;;  %v371_v5 = vld [vmem:[%s331_s8 + $0x8] sm:$0xff]  ;;  %v374_v8 = vlaneseq  ;;  %s2075_s25 = smov 112   ;;  %s2076_s26 = smov 120  }
  0x1a   : > { %1899 = vmatprep.subr.mxu1 %v373_v2  ;;  %v370_v6 = vld [vmem:[%s331_s8] sm:$0xff]  ;;  %vm492_vm2 = vcmask 64512   ;;  %s2077_s8 = smov 104   ;;  %s2078_s12 = smov 96   ;;  %v368_v39 = vld [vmem:[%s2351_s1 + $0x8] sm:$0xff]  ;;  %vm845_vm3 = vcmask 130048  }
  0x1b   : > { %1900 = vmatpush3.msra.mxu1 %v373_v2  ;;  %v2171_v9 = vshrl.u32 %v374_v8, 7  ;;  %v2174_v11 = vld [vmem:[%s350_s22] sm:$0xff]  ;;  %s2079_s19 = smov 64   ;;  %s2080_s20 = smov 8   ;;  %vm1310_vm4 = vcmask 195584   ;;  %vm1554_vm5 = vcmask 523264  }
  0x1c   : > { %1901 = vmatprep.subr.mxu1 %v372_v3  ;;  %v367_v41 = vld [vmem:[%s2351_s1] sm:$0xff]  ;;  %s2081_s21 = smov 16   ;;  %s2082_s22 = smov 24  }
  0x1d   : > { %1902 = vmatpush3.msra.mxu1 %v372_v3  ;;  %v376_v10 = vsub.s32 0, %v2171_v9 }
  0x1e   : > { %1903 = vmatprep.subr.mxu1 %v371_v5 }
  0x1f   : > { %v2163_v4 = vld [vmem:[#allocation2] sm:$0xff]  ;;  %1904 = vmatpush3.msra.mxu1 %v371_v5  ;;  %v2167_v7 = vld [vmem:[#allocation2 + $0x8] sm:$0xff]  ;;  %v377_v12 = vrot.slane %v2174_v11, %v376_v10 }
  0x20   : > { %1907 = vmatprep.mubr.msk.f32.mxu1 %vm378_vm1, %v2163_v4  ;;  %1905 = vmatprep.subr.mxu1 %v370_v6 }
  0x21   : > { %1906 = vmatpush3.msra.mxu1 %v370_v6 }
  0x22   : > { %1908 = vmatmul.mubr.msk.f32.vlgmr.msra.gmra.mxu1 %vm378_vm1, %v2167_v7 }
  0xe2   : > { %v1909_v13 = vpop.f32.mrf.mxu1 }
  0xe3   : > { %v2177_v14 = vadd.f32 %v1909_v13, %v377_v12 }
  0xe4   : > { %v451_v15 = vpop.f32.mrf.mxu1 }
  0xe5   : > { %v2179_v16 = vadd.f32 %v451_v15, %v377_v12  ;;  %470 = vrot.lane.b32.xlu1 %v2177_v14, %s2075_s25  ;;  %464 = vrot.lane.b32.xlu0 %v2177_v14, %s2076_s26  ;;  %v481_v27 = vmul.f32 0.35355338, %v2177_v14 }
  0xe7   : > { %v480_v17 = vmul.f32 0.35355338, %v2179_v16 }
  0xe9   : > { %476 = vrot.lane.b32.xlu1 %v2177_v14, %s2077_s8  ;;  %462 = vrot.lane.b32.xlu0 %v2179_v16, %s2076_s26 }
  0xea   : > { %1914 = vmatprep.mubr.msk.f32.mxu1 %vm492_vm2, %v480_v17 }
  0xed   : > { %474 = vrot.lane.b32.xlu1 %v2179_v16, %s2077_s8  ;;  %468 = vrot.lane.b32.xlu0 %v2179_v16, %s2075_s25 }
  0xf1   : > { %490 = vrot.lane.b32.xlu0 %v2177_v14, %s2078_s12 }
  0xf5   : > { %488 = vrot.lane.b32.xlu0 %v2179_v16, %s2078_s12 }
 0x157   : > { %v2191_v18 = vpop.permute.xlu1 %470  ;;  %v2193_v19 = vpop.permute.xlu0 %464 }
 0x158   : > { %580 = vrot.lane.b32.xlu1 %v2193_v19, %s2078_s12  ;;  %669 = vrot.lane.b32.xlu0 %v2191_v18, %s2078_s12  ;;  %v483_v32 = vmul.f32 0.35355338, %v2193_v19  ;;  %v485_v36 = vmul.f32 0.35355338, %v2191_v18 }
 0x15b   : > { %v2197_v20 = vpop.permute.xlu0 %462  ;;  %v2201_v22 = vpop.permute.xlu1 %476 }
 0x15c   : > { %578 = vrot.lane.b32.xlu1 %v2197_v20, %s2078_s12  ;;  %v482_v21 = vmul.f32 0.35355338, %v2197_v20  ;;  %v487_v38 = vmul.f32 0.35355338, %v2201_v22 }
 0x15e   : > { %1921 = vmatprep.mubr.msk.f32.mxu0 %vm492_vm2, %v482_v21 }
 0x15f   : > { %v2204_v23 = vpop.permute.xlu0 %468  ;;  %v2208_v24 = vpop.permute.xlu1 %474 }
 0x160   : > { %758 = vrot.lane.b32.xlu1 %v2201_v22, %s2078_s12  ;;  %667 = vrot.lane.b32.xlu0 %v2204_v23, %s2078_s12  ;;  %v484_v28 = vmul.f32 0.35355338, %v2204_v23  ;;  %v486_v35 = vmul.f32 0.35355338, %v2208_v24 }
 0x163   : > { %v491_v25 = vpop.permute.xlu0 %490 }
 0x164   : > { %756 = vrot.lane.b32.xlu1 %v2208_v24, %s2078_s12  ;;  %1910 = vmatprep.subr.msk.mxu1 %vm492_vm2, %v491_v25 }
 0x165   : > { %1911 = vmatpush3.xpose.msk.msra.mxu1 %vm492_vm2, %v491_v25 }
 0x167   : > { %v489_v26 = vpop.permute.xlu0 %488 }
 0x168   : > { %1912 = vmatprep.subr.msk.mxu1 %vm492_vm2, %v489_v26 }
 0x169   : > { %1913 = vmatpush3.xpose.msk.msra.mxu1 %vm492_vm2, %v489_v26 }
 0x16c   : > { %1915 = vmatmul.mubr.msk.f32.vlgmr.msra.gmra.mxu1 %vm492_vm2, %v481_v27 }
 0x16d   : > { %1928 = vmatprep.mubr.msk.f32.mxu1 %vm492_vm2, %v484_v28 }
 0x1ca   : > { %v581_v29 = vpop.permute.xlu1 %580  ;;  %v670_v30 = vpop.permute.xlu0 %669 }
 0x1cb   : > { %1917 = vmatprep.subr.msk.mxu0 %vm492_vm2, %v581_v29  ;;  %1924 = vmatprep.subr.msk.mxu1 %vm492_vm2, %v670_v30 }
 0x1cc   : > { %1918 = vmatpush3.xpose.msk.msra.mxu0 %vm492_vm2, %v581_v29  ;;  %1925 = vmatpush3.xpose.msk.msra.mxu1 %vm492_vm2, %v670_v30 }
 0x1ce   : > { %v579_v31 = vpop.permute.xlu1 %578 }
 0x1cf   : > { %1919 = vmatprep.subr.msk.mxu0 %vm492_vm2, %v579_v31 }
 0x1d0   : > { %1920 = vmatpush3.xpose.msk.msra.mxu0 %vm492_vm2, %v579_v31 }
 0x1d2   : > { %v759_v33 = vpop.permute.xlu1 %758  ;;  %v668_v34 = vpop.permute.xlu0 %667 }
 0x1d3   : > { %1922 = vmatmul.mubr.msk.f32.vlgmr.msra.gmra.mxu0 %vm492_vm2, %v483_v32  ;;  %1926 = vmatprep.subr.msk.mxu1 %vm492_vm2, %v668_v34 }
 0x1d4   : > { %1931 = vmatprep.subr.msk.mxu0 %vm492_vm2, %v759_v33  ;;  %1927 = vmatpush3.xpose.msk.msra.mxu1 %vm492_vm2, %v668_v34 }
 0x1d5   : > { %1932 = vmatpush3.xpose.msk.msra.mxu0 %vm492_vm2, %v759_v33  ;;  %1935 = vmatprep.mubr.msk.f32.mxu0 %vm492_vm2, %v486_v35 }
 0x1d6   : > { %v757_v37 = vpop.permute.xlu1 %756 }
 0x1d7   : > { %1929 = vmatmul.mubr.msk.f32.vlgmr.msra.gmra.mxu1 %vm492_vm2, %v485_v36  ;;  %1933 = vmatprep.subr.msk.mxu0 %vm492_vm2, %v757_v37 }
 0x1d9   : > { %1934 = vmatpush3.xpose.msk.msra.mxu0 %vm492_vm2, %v757_v37 }
 0x1dc   : > { %1936 = vmatmul.mubr.msk.f32.vlgmr.msra.gmra.mxu0 %vm492_vm2, %v487_v38 }
 0x22c   : > { %v1916_v40 = vpop.f32.mrf.mxu1 }
 0x22d   : > { %v575_v42 = vadd.f32 %v1916_v40, %v368_v39 }
 0x22e   : > { %v569_v43 = vpop.f32.mrf.mxu1 }
 0x22f   : > { %v570_v44 = vadd.f32 %v569_v43, %v367_v41  ;;  %v849_v45 = vsel %vm845_vm3, %v575_v42, -inf }
 0x230   : > { %850 = vmax.xlane.f32.xlu1 %v849_v45 }
 0x231   : > { %v846_v46 = vsel %vm845_vm3, %v570_v44, -inf }
 0x232   : > { %847 = vmax.xlane.f32.xlu0 %v846_v46 }
 0x293   : > { %v1923_v47 = vpop.f32.mrf.mxu0 }
 0x294   : > { %v664_v48 = vadd.f32 %v1923_v47, %v368_v39 }
 0x295   : > { %v658_v49 = vpop.f32.mrf.mxu0 }
 0x296   : > { %v659_v50 = vadd.f32 %v658_v49, %v367_v41  ;;  %v855_v51 = vsel %vm845_vm3, %v664_v48, -inf }
 0x297   : > { %v1930_v52 = vpop.f32.mrf.mxu1  ;;  %856 = vmax.xlane.f32.xlu0 %v855_v51 }
 0x298   : > { %v753_v54 = vadd.f32 %v1930_v52, %v368_v39  ;;  %v852_v56 = vsel %vm845_vm3, %v659_v50, -inf }
 0x299   : > { %v747_v53 = vpop.f32.mrf.mxu1 }
 0x29a   : > { %v748_v55 = vadd.f32 %v747_v53, %v367_v41  ;;  %v861_v61 = vsel %vm845_vm3, %v753_v54, -inf }
 0x29b   : > { %853 = vmax.xlane.f32.xlu0 %v852_v56 }
 0x29c   : > { %v1937_v57 = vpop.f32.mrf.mxu0  ;;  %v858_v58 = vsel %vm845_vm3, %v748_v55, -inf }
 0x29d   : > { %859 = vmax.xlane.f32.xlu1 %v858_v58  ;;  %v842_v59 = vadd.f32 %v1937_v57, %v368_v39 }
 0x29e   : > { %v836_v60 = vpop.f32.mrf.mxu0 }
 0x29f   : > { %v837_v62 = vadd.f32 %v836_v60, %v367_v41  ;;  %862 = vmax.xlane.f32.xlu0 %v861_v61  ;;  %v867_v0 = vsel %vm845_vm3, %v842_v59, -inf }
 0x2a1   : > { %v864_v63 = vsel %vm845_vm3, %v837_v62, -inf }
 0x2a2   : > { %865 = vmax.xlane.f32.xlu1 %v864_v63 }
 0x2a3   : > { %868 = vmax.xlane.f32.xlu0 %v867_v0 }
 0x2b3   : > { %936 = vrot.lane.b32.xlu1 %v2177_v14, %s2079_s19 }
 0x2b7   : > { %1023 = vrot.lane.b32.xlu1 %v2193_v19, %s2079_s19 }
 0x2b9   : > { %934 = vrot.lane.b32.xlu0 %v2179_v16, %s2079_s19  ;;  %v851_v1 = vpop.xlane.xlu1 %850 }
 0x2ba   : > { %v871_v2 = vsub.f32 %v575_v42, %v851_v1 }
 0x2bb   : > { %1021 = vrot.lane.b32.xlu1 %v2197_v20, %s2079_s19  ;;  %v848_v5 = vpop.xlane.xlu0 %847 }
 0x2bc   : > { %v880_v3 = vmul.f32 1.442695, %v871_v2  ;;  %v870_v6 = vsub.f32 %v570_v44, %v848_v5 }
 0x2bd   : > { %1110 = vrot.lane.b32.xlu0 %v2191_v18, %s2079_s19 }
 0x2be   : > { %2023 = vpow2.f32 %v880_v3  ;;  %v878_v8 = vmul.f32 1.442695, %v870_v6 }
 0x2bf   : > { %1197 = vrot.lane.b32.xlu1 %v2201_v22, %s2079_s19 }
 0x2c0   : > { %2025 = vpow2.f32 %v878_v8 }
 0x2cb   : > { %v2265_v10 = vpop.eup %2023 }
 0x2cc   : > { %v897_v12 = vsel %vm845_vm3, %v2265_v10, 0.0 }
 0x2cd   : > { %v2269_v13 = vpop.eup %2025 }
 0x2ce   : > { %v894_v14 = vsel %vm845_vm3, %v2269_v13, 0.0 }
 0x2dc   : > { %898 = vadd.xlane.f32.xlu0 %v897_v12 }
 0x2e3   : > { %895 = vadd.xlane.f32.xlu1 %v894_v14 }
 0x320   : > { %v857_v15 = vpop.xlane.xlu0 %856 }
 0x321   : > { %v873_v16 = vsub.f32 %v664_v48, %v857_v15 }
 0x323   : > { %v884_v17 = vmul.f32 1.442695, %v873_v16 }
 0x324   : > { %v854_v18 = vpop.xlane.xlu0 %853 }
 0x325   : > { %2027 = vpow2.f32 %v884_v17  ;;  %v872_v19 = vsub.f32 %v659_v50, %v854_v18  ;;  %v1316_v17 = vld [vmem:[%s2137_s11 + $0x18] sm:$0xff] }
 0x326   : > { %v860_v20 = vpop.xlane.xlu1 %859 }
 0x327   : > { %v882_v21 = vmul.f32 1.442695, %v872_v19  ;;  %v874_v22 = vsub.f32 %v748_v55, %v860_v20  ;;  %v1315_v19 = vld [vmem:[%s2137_s11 + $0x10] sm:$0xff]  ;;  %v1314_v20 = vld [vmem:[%s2137_s11 + $0x8] sm:$0xff] }
 0x328   : > { %v863_v25 = vpop.xlane.xlu0 %862 }
 0x329   : > { %2029 = vpow2.f32 %v882_v21  ;;  %v886_v26 = vmul.f32 1.442695, %v874_v22  ;;  %v875_v27 = vsub.f32 %v753_v54, %v863_v25  ;;  %v1313_v22 = vld [vmem:[%s2137_s11] sm:$0xff] }
 0x32b   : > { %2031 = vpow2.f32 %v886_v26  ;;  %v888_v28 = vmul.f32 1.442695, %v875_v27  ;;  %v866_v29 = vpop.xlane.xlu1 %865 }
 0x32c   : > { %v876_v30 = vsub.f32 %v837_v62, %v866_v29  ;;  %v869_v31 = vpop.xlane.xlu0 %868 }
 0x32d   : > { %2033 = vpow2.f32 %v888_v28  ;;  %v877_v32 = vsub.f32 %v842_v59, %v869_v31 }
 0x32e   : > { %v890_v33 = vmul.f32 1.442695, %v876_v30 }
 0x32f   : > { %v892_v34 = vmul.f32 1.442695, %v877_v32  ;;  %v937_v35 = vpop.permute.xlu1 %936 }
 0x330   : > { %2035 = vpow2.f32 %v890_v33  ;;  %1938 = vmatprep.subr.mxu1 %v937_v35  ;;  %v935_v36 = vpop.permute.xlu0 %934 }
 0x331   : > { %2037 = vpow2.f32 %v892_v34  ;;  %1939 = vmatpush3.msra.mxu1 %v937_v35 }
 0x332   : > { %v2028_v37 = vpop.eup %2027  ;;  %1940 = vmatprep.subr.mxu1 %v935_v36 }
 0x333   : > { %v1024_v38 = vpop.permute.xlu1 %1023  ;;  %1941 = vmatpush3.msra.mxu1 %v935_v36  ;;  %v903_v39 = vsel %vm845_vm3, %v2028_v37, 0.0 }
 0x334   : > { %1945 = vmatprep.subr.mxu1 %v1024_v38  ;;  %904 = vadd.xlane.f32.xlu0 %v903_v39  ;;  %v1111_v40 = vpop.permute.xlu0 %1110 }
 0x335   : > { %1952 = vmatprep.subr.mxu0 %v1111_v40 }
 0x336   : > { %v2030_v41 = vpop.eup %2029  ;;  %1953 = vmatpush3.msra.mxu0 %v1111_v40 }
 0x337   : > { %v900_v42 = vsel %vm845_vm3, %v2030_v41, 0.0  ;;  %v1022_v51 = vpop.permute.xlu1 %1021 }
 0x338   : > { %v2032_v43 = vpop.eup %2031  ;;  %901 = vadd.xlane.f32.xlu1 %v900_v42 }
 0x339   : > { %v906_v45 = vsel %vm845_vm3, %v2032_v43, 0.0 }
 0x33a   : > { %v2034_v44 = vpop.eup %2033 }
 0x33b   : > { %v909_v46 = vsel %vm845_vm3, %v2034_v44, 0.0  ;;  %v1198_v52 = vpop.permute.xlu1 %1197 }
 0x33c   : > { %907 = vadd.xlane.f32.xlu1 %v906_v45  ;;  %910 = vadd.xlane.f32.xlu0 %v909_v46 }
 0x33d   : > { %v2036_v47 = vpop.eup %2035 }
 0x33e   : > { %v2038_v48 = vpop.eup %2037  ;;  %v912_v49 = vsel %vm845_vm3, %v2036_v47, 0.0 }
 0x33f   : > { %v915_v50 = vsel %vm845_vm3, %v2038_v48, 0.0 }
 0x340   : > { %913 = vadd.xlane.f32.xlu1 %v912_v49  ;;  %916 = vadd.xlane.f32.xlu0 %v915_v50 }
 0x351   : > { %1195 = vrot.lane.b32.xlu1 %v2208_v24, %s2079_s19 }
 0x356   : > { %1108 = vrot.lane.b32.xlu0 %v2204_v23, %s2079_s19 }
 0x365   : > { %v899_v53 = vpop.xlane.xlu0 %898 }
 0x366   : > { %2039 = vrcp.f32 %v899_v53 }
 0x36c   : > { %v896_v54 = vpop.xlane.xlu1 %895 }
 0x36d   : > { %2041 = vrcp.f32 %v896_v54 }
 0x373   : > { %v2040_v55 = vpop.eup %2039 }
 0x374   : > { %v921_v58 = vmul.f32 %v2040_v55, %v2265_v10 }
 0x37a   : > { %v2042_v56 = vpop.eup %2041 }
 0x37b   : > { %v919_v57 = vmul.f32 %v2042_v56, %v2269_v13 }
 0x37d   : > { %1942 = vmatprep.mubr.msk.f32.mxu1 %vm845_vm3, %v919_v57 }
 0x37e   : > { %1943 = vmatmul.mubr.msk.f32.vlgmr.msra.gmra.mxu1 %vm845_vm3, %v921_v58 }
 0x37f   : > { %1946 = vmatpush3.msra.mxu1 %v1024_v38 }
 0x380   : > { %1947 = vmatprep.subr.mxu1 %v1022_v51 }
 0x381   : > { %1948 = vmatpush3.msra.mxu1 %v1022_v51 }
 0x382   : > { %1959 = vmatprep.subr.mxu1 %v1198_v52 }
 0x3bd   : > { %v905_v23 = vpop.xlane.xlu0 %904 }
 0x3be   : > { %2043 = vrcp.f32 %v905_v23 }
 0x3c1   : > { %v902_v24 = vpop.xlane.xlu1 %901 }
 0x3c2   : > { %2045 = vrcp.f32 %v902_v24 }
 0x3c5   : > { %v908_v59 = vpop.xlane.xlu1 %907  ;;  %v911_v60 = vpop.xlane.xlu0 %910 }
 0x3c6   : > { %2047 = vrcp.f32 %v908_v59  ;;  %v1446_v59 = vld [vmem:[%s2142_s14 + $0x18] sm:$0xff] }
 0x3c7   : > { %2049 = vrcp.f32 %v911_v60  ;;  %v1445_v60 = vld [vmem:[%s2142_s14 + $0x10] sm:$0xff] }
 0x3c9   : > { %v914_v61 = vpop.xlane.xlu1 %913  ;;  %v917_v62 = vpop.xlane.xlu0 %916 }
 0x3ca   : > { %2051 = vrcp.f32 %v914_v61  ;;  %v1444_v61 = vld [vmem:[%s2142_s14 + $0x8] sm:$0xff] }
 0x3cb   : > { %2053 = vrcp.f32 %v917_v62  ;;  %v2044_v0 = vpop.eup %2043  ;;  %v1443_v62 = vld [vmem:[%s2142_s14] sm:$0xff] }
 0x3cc   : > { %v925_v3 = vmul.f32 %v2044_v0, %v2028_v37 }
 0x3cd   : > { %v1109_v63 = vpop.permute.xlu0 %1108  ;;  %v1196_v8 = vpop.permute.xlu1 %1195 }
 0x3ce   : > { %1954 = vmatprep.subr.mxu0 %v1109_v63 }
 0x3cf   : > { %v2046_v1 = vpop.eup %2045  ;;  %1955 = vmatpush3.msra.mxu0 %v1109_v63 }
 0x3d0   : > { %v923_v2 = vmul.f32 %v2046_v1, %v2030_v41  ;;  %1966 = vmatprep.subr.mxu0 %v1316_v17 }
 0x3d2   : > { %1949 = vmatprep.mubr.msk.f32.mxu1 %vm845_vm3, %v923_v2 }
 0x3d3   : > { %v2048_v5 = vpop.eup %2047  ;;  %1950 = vmatmul.mubr.msk.f32.vlgmr.msra.gmra.mxu1 %vm845_vm3, %v925_v3 }
 0x3d4   : > { %v2050_v6 = vpop.eup %2049  ;;  %1960 = vmatpush3.msra.mxu1 %v1198_v52  ;;  %v927_v10 = vmul.f32 %v2048_v5, %v2032_v43  ;;  %v1319_v43 = vsub.s32 2, %v2171_v9 }
 0x3d5   : > { %1961 = vmatprep.subr.mxu1 %v1196_v8  ;;  %v929_v12 = vmul.f32 %v2050_v6, %v2034_v44  ;;  %v1433_v6 = vsub.s32 3, %v2171_v9 }
 0x3d6   : > { %1962 = vmatpush3.msra.mxu1 %v1196_v8  ;;  %1956 = vmatprep.mubr.msk.f32.mxu0 %vm845_vm3, %v927_v10  ;;  %v1320_v44 = vrot.slane %v2174_v11, %v1319_v43  ;;  %v1439_v8 = vsub.s32 4, %v2171_v9 }
 0x3d7   : > { %v2052_v13 = vpop.eup %2051  ;;  %1957 = vmatmul.mubr.msk.f32.vlgmr.msra.gmra.mxu0 %vm845_vm3, %v929_v12  ;;  %1977 = vmatprep.subr.mxu1 %v1446_v59  ;;  %v1434_v10 = vrot.slane %v2174_v11, %v1433_v6  ;;  %v1666_v6 = vsub.s32 6, %v2171_v9 }
 0x3d8   : > { %v2054_v14 = vpop.eup %2053  ;;  %v931_v15 = vmul.f32 %v2052_v13, %v2036_v47  ;;  %1967 = vmatpush3.msra.mxu0 %v1316_v17 }
 0x3d9   : > { %v933_v16 = vmul.f32 %v2054_v14, %v2038_v48  ;;  %1968 = vmatprep.subr.mxu0 %v1315_v19  ;;  %v1440_v14 = vrot.slane %v2174_v11, %v1439_v8  ;;  %v1672_v8 = vsub.s32 7, %v2171_v9 }
 0x3da   : > { %1963 = vmatprep.mubr.msk.f32.mxu1 %vm845_vm3, %v931_v15  ;;  %1969 = vmatpush3.msra.mxu0 %v1315_v19 }
 0x3db   : > { %1964 = vmatmul.mubr.msk.f32.vlgmr.msra.gmra.mxu1 %vm845_vm3, %v933_v16  ;;  %1970 = vmatprep.subr.mxu0 %v1314_v20 }
 0x3dc   : > { %1971 = vmatpush3.msra.mxu0 %v1314_v20  ;;  %1978 = vmatpush3.msra.mxu1 %v1446_v59 }
 0x3dd   : > { %1972 = vmatprep.subr.mxu0 %v1313_v22  ;;  %1979 = vmatprep.subr.mxu1 %v1445_v60 }
 0x3de   : > { %1973 = vmatpush3.msra.mxu0 %v1313_v22  ;;  %1980 = vmatpush3.msra.mxu1 %v1445_v60  ;;  %v1548_v22 = vld [vmem:[%s2147_s17 + $0x30] sm:$0xff] }
 0x3df   : > { %1981 = vmatprep.subr.mxu1 %v1444_v61 }
 0x3e0   : > { %1982 = vmatpush3.msra.mxu1 %v1444_v61 }
 0x3e1   : > { %1983 = vmatprep.subr.mxu1 %v1443_v62 }
 0x3e2   : > { %1984 = vmatpush3.msra.mxu1 %v1443_v62 }
 0x43e   : > { %v1944_v18 = vpop.f32.mrf.mxu1 }
 0x440   : > { %v1012_v21 = vpop.f32.mrf.mxu1 }
 0x493   : > { %v1951_v25 = vpop.f32.mrf.mxu1 }
 0x494   : > { %1286 = vrot.lane.b32.xlu1 %v1951_v25, %s2080_s20  ;;  %v1547_v25 = vld [vmem:[%s2147_s17 + $0x28] sm:$0xff] }
 0x495   : > { %v1099_v26 = vpop.f32.mrf.mxu1 }
 0x496   : > { %1284 = vrot.lane.b32.xlu0 %v1099_v26, %s2080_s20  ;;  %v1546_v26 = vld [vmem:[%s2147_s17 + $0x20] sm:$0xff] }
 0x497   : > { %v1958_v27 = vpop.f32.mrf.mxu0 }
 0x498   : > { %1294 = vrot.lane.b32.xlu1 %v1958_v27, %s2081_s21  ;;  %v1545_v27 = vld [vmem:[%s2147_s17 + $0x18] sm:$0xff] }
 0x499   : > { %v1186_v28 = vpop.f32.mrf.mxu0 }
 0x49a   : > { %1292 = vrot.lane.b32.xlu0 %v1186_v28, %s2081_s21  ;;  %v1544_v28 = vld [vmem:[%s2147_s17 + $0x10] sm:$0xff] }
 0x49b   : > { %v1965_v29 = vpop.f32.mrf.mxu1 }
 0x49c   : > { %1302 = vrot.lane.b32.xlu1 %v1965_v29, %s2082_s22  ;;  %v1543_v29 = vld [vmem:[%s2147_s17 + $0x8] sm:$0xff] }
 0x49d   : > { %v1273_v30 = vpop.f32.mrf.mxu1 }
 0x49e   : > { %1300 = vrot.lane.b32.xlu0 %v1273_v30, %s2082_s22  ;;  %v1542_v30 = vld [vmem:[%s2147_s17] sm:$0xff] }
 0x506   : > { %v1287_v31 = vpop.permute.xlu1 %1286 }
 0x507   : > { %v1307_v37 = vsel %vm492_vm2, %v1944_v18, %v1287_v31  ;;  %v1449_v31 = vsub.s32 1, %v2171_v9 }
 0x508   : > { %v1285_v32 = vpop.permute.xlu0 %1284 }
 0x509   : > { %v1306_v35 = vsel %vm492_vm2, %v1012_v21, %v1285_v32  ;;  %v1549_v21 = vld [vmem:[%s2147_s17 + $0x38] sm:$0xff]  ;;  %v1450_v32 = vrot.slane %v2174_v11, %v1449_v31 }
 0x50a   : > { %v1295_v33 = vpop.permute.xlu1 %1294  ;;  %1988 = vmatprep.subr.mxu0 %v1549_v21 }
 0x50b   : > { %v1309_v40 = vsel %vm845_vm3, %v1307_v37, %v1295_v33 }
 0x50c   : > { %v1293_v34 = vpop.permute.xlu0 %1292 }
 0x50d   : > { %v1308_v38 = vsel %vm845_vm3, %v1306_v35, %v1293_v34 }
 0x50e   : > { %v1303_v36 = vpop.permute.xlu1 %1302 }
 0x50f   : > { %v1312_v42 = vsel %vm1310_vm4, %v1309_v40, %v1303_v36 }
 0x510   : > { %v1301_v39 = vpop.permute.xlu0 %1300 }
 0x511   : > { %v1311_v41 = vsel %vm1310_vm4, %v1308_v38, %v1301_v39 }
 0x512   : > { %1974 = vmatprep.mubr.msk.f32.mxu0 %vm378_vm1, %v1311_v41 }
 0x513   : > { %1975 = vmatmul.mubr.msk.f32.vlgmr.msra.gmra.mxu0 %vm378_vm1, %v1312_v42 }
 0x514   : > { %1989 = vmatpush3.msra.mxu0 %v1549_v21 }
 0x515   : > { %1990 = vmatprep.subr.mxu0 %v1548_v22 }
 0x516   : > { %1991 = vmatpush3.msra.mxu0 %v1548_v22 }
 0x517   : > { %1992 = vmatprep.subr.mxu0 %v1547_v25 }
 0x518   : > { %1993 = vmatpush3.msra.mxu0 %v1547_v25 }
 0x519   : > { %1994 = vmatprep.subr.mxu0 %v1546_v26 }
 0x51a   : > { %1995 = vmatpush3.msra.mxu0 %v1546_v26 }
 0x51b   : > { %1996 = vmatprep.subr.mxu0 %v1545_v27 }
 0x51c   : > { %1997 = vmatpush3.msra.mxu0 %v1545_v27 }
 0x51d   : > { %1998 = vmatprep.subr.mxu0 %v1544_v28 }
 0x51e   : > { %1999 = vmatpush3.msra.mxu0 %v1544_v28 }
 0x51f   : > { %2000 = vmatprep.subr.mxu0 %v1543_v29 }
 0x520   : > { %2001 = vmatpush3.msra.mxu0 %v1543_v29 }
 0x521   : > { %2002 = vmatprep.subr.mxu0 %v1542_v30 }
 0x522   : > { %2003 = vmatpush3.msra.mxu0 %v1542_v30 }
 0x5d3   : > { %v1976_v45 = vpop.f32.mrf.mxu0 }
 0x5d4   : > { %v1399_v46 = vadd.f32 %v1976_v45, %v1320_v44 }
 0x5d5   : > { %v1393_v47 = vpop.f32.mrf.mxu0 }
 0x5d6   : > { %v1394_v48 = vadd.f32 %v1393_v47, %v1320_v44  ;;  %v1403_v49 = vadd.f32 %v1399_v46, %v2167_v7  ;;  %v1552_v47 = vsub.s32 5, %v2171_v9 }
 0x5d8   : > { %v1407_v50 = vsel %vm378_vm1, %v1403_v49, 0.0  ;;  %v1402_v51 = vadd.f32 %v1394_v48, %v2163_v4  ;;  %v1553_v48 = vrot.slane %v2174_v11, %v1552_v47 }
 0x5d9   : > { %1408 = vadd.xlane.f32.xlu1 %v1407_v50 }
 0x5da   : > { %v1404_v52 = vsel %vm378_vm1, %v1402_v51, 0.0 }
 0x5db   : > { %1405 = vadd.xlane.f32.xlu0 %v1404_v52 }
 0x662   : > { %v1409_v53 = vpop.xlane.xlu1 %1408 }
 0x663   : > { %v1412_v54 = vmul.f32 0.03125, %v1409_v53 }
 0x664   : > { %v1406_v55 = vpop.xlane.xlu0 %1405 }
 0x665   : > { %v1411_v56 = vmul.f32 0.03125, %v1406_v55  ;;  %v1414_v57 = vsub.f32 %v1403_v49, %v1412_v54 }
 0x667   : > { %v1413_v58 = vsub.f32 %v1402_v51, %v1411_v56  ;;  %v1416_v24 = vmul.f32 %v1414_v57, %v1414_v57 }
 0x669   : > { %v1415_v23 = vmul.f32 %v1413_v58, %v1413_v58  ;;  %v1420_v4 = vsel %vm378_vm1, %v1416_v24, 0.0 }
 0x66b   : > { %v1417_v7 = vsel %vm378_vm1, %v1415_v23, 0.0 }
 0x66c   : > { %1418 = vadd.xlane.f32.xlu0 %v1417_v7 }
 0x670   : > { %1421 = vadd.xlane.f32.xlu0 %v1420_v4 }
 0x6f5   : > { %v1419_v63 = vpop.xlane.xlu0 %1418 }
 0x6f6   : > { %v1423_v0 = vmul.f32 0.03125, %v1419_v63 }
 0x6f8   : > { %v1425_v1 = vadd.f32 1e-12, %v1423_v0 }
 0x6f9   : > { %v1422_v2 = vpop.xlane.xlu0 %1421 }
 0x6fa   : > { %2055 = vrsqrt.f32 %v1425_v1  ;;  %v1424_v3 = vmul.f32 0.03125, %v1422_v2 }
 0x6fc   : > { %v1426_v5 = vadd.f32 1e-12, %v1424_v3 }
 0x6fe   : > { %2057 = vrsqrt.f32 %v1426_v5 }
 0x707   : > { %v2056_v12 = vpop.eup %2055 }
 0x708   : > { %v1429_v13 = vmul.f32 %v2056_v12, %v1413_v58 }
 0x70a   : > { %v1435_v15 = vmul.f32 %v1434_v10, %v1429_v13  ;;  %v1673_v13 = vrot.slane %v2174_v11, %v1672_v8 }
 0x70b   : > { %v2058_v16 = vpop.eup %2057 }
 0x70c   : > { %v1430_v17 = vmul.f32 %v2058_v16, %v1414_v57  ;;  %v1441_v18 = vadd.f32 %v1440_v14, %v1435_v15 }
 0x70e   : > { %v1436_v19 = vmul.f32 %v1434_v10, %v1430_v17  ;;  %1985 = vmatprep.mubr.msk.f32.mxu1 %vm378_vm1, %v1441_v18  ;;  %v1667_v10 = vrot.slane %v2174_v11, %v1666_v6 }
 0x710   : > { %v1442_v20 = vadd.f32 %v1440_v14, %v1436_v19 }
 0x712   : > { %1986 = vmatmul.mubr.msk.f32.vlgmr.msra.gmra.mxu1 %vm378_vm1, %v1442_v20 }
 0x7d2   : > { %v1987_v33 = vpop.f32.mrf.mxu1 }
 0x7d3   : > { %v1529_v34 = vadd.f32 %v1987_v33, %v1450_v32 }
 0x7d4   : > { %v1523_v35 = vpop.f32.mrf.mxu1 }
 0x7d5   : > { %v1535_v36 = vmul.f32 0.70710677, %v1529_v34  ;;  %v1524_v37 = vadd.f32 %v1523_v35, %v1450_v32  ;;  %v1533_v44 = vmul.f32 0.5, %v1529_v34 }
 0x7d7   : > { %2059 = verf.f32 %v1535_v36  ;;  %v1534_v38 = vmul.f32 0.70710677, %v1524_v37  ;;  %v1532_v42 = vmul.f32 0.5, %v1524_v37 }
 0x7d9   : > { %2061 = verf.f32 %v1534_v38 }
 0x7e4   : > { %v2060_v39 = vpop.eup %2059 }
 0x7e5   : > { %v1539_v41 = vadd.f32 1.0, %v2060_v39 }
 0x7e6   : > { %v2062_v40 = vpop.eup %2061 }
 0x7e7   : > { %v1538_v43 = vadd.f32 1.0, %v2062_v40  ;;  %v1541_v46 = vmul.f32 %v1539_v41, %v1533_v44 }
 0x7e9   : > { %v1540_v45 = vmul.f32 %v1538_v43, %v1532_v42 }
 0x7eb   : > { %2004 = vmatprep.mubr.msk.f32.mxu0 %vm1554_vm5, %v1540_v45 }
 0x7ec   : > { %2005 = vmatmul.mubr.msk.f32.vlgmr.msra.gmra.mxu0 %vm1554_vm5, %v1541_v46 }
 0x8ac   : > { %v2006_v49 = vpop.f32.mrf.mxu0 }
 0x8ad   : > { %v1633_v50 = vadd.f32 %v2006_v49, %v1553_v48 }
 0x8ae   : > { %v1627_v51 = vpop.f32.mrf.mxu0 }
 0x8af   : > { %v1628_v52 = vadd.f32 %v1627_v51, %v1553_v48  ;;  %v1637_v53 = vadd.f32 %v1633_v50, %v1442_v20 }
 0x8b1   : > { %v1641_v54 = vsel %vm378_vm1, %v1637_v53, 0.0  ;;  %v1636_v55 = vadd.f32 %v1628_v52, %v1441_v18 }
 0x8b2   : > { %1642 = vadd.xlane.f32.xlu0 %v1641_v54 }
 0x8b3   : > { %v1638_v56 = vsel %vm378_vm1, %v1636_v55, 0.0 }
 0x8b4   : > { %1639 = vadd.xlane.f32.xlu1 %v1638_v56 }
 0x93b   : > { %v1643_v57 = vpop.xlane.xlu0 %1642 }
 0x93c   : > { %v1645_v58 = vmul.f32 0.03125, %v1643_v57 }
 0x93d   : > { %v1640_v23 = vpop.xlane.xlu1 %1639 }
 0x93e   : > { %v1647_v7 = vsub.f32 %v1637_v53, %v1645_v58  ;;  %v1644_v24 = vmul.f32 0.03125, %v1640_v23 }
 0x940   : > { %v1646_v4 = vsub.f32 %v1636_v55, %v1644_v24  ;;  %v1649_v59 = vmul.f32 %v1647_v7, %v1647_v7 }
 0x942   : > { %v1653_v60 = vsel %vm378_vm1, %v1649_v59, 0.0  ;;  %v1648_v61 = vmul.f32 %v1646_v4, %v1646_v4 }
 0x943   : > { %1654 = vadd.xlane.f32.xlu0 %v1653_v60 }
 0x944   : > { %v1650_v62 = vsel %vm378_vm1, %v1648_v61, 0.0 }
 0x945   : > { %1651 = vadd.xlane.f32.xlu1 %v1650_v62 }
 0x9cc   : > { %v1655_v63 = vpop.xlane.xlu0 %1654 }
 0x9cd   : > { %v1657_v0 = vmul.f32 0.03125, %v1655_v63 }
 0x9ce   : > { %v1652_v1 = vpop.xlane.xlu1 %1651 }
 0x9cf   : > { %v1659_v2 = vadd.f32 1e-12, %v1657_v0  ;;  %v1656_v3 = vmul.f32 0.03125, %v1652_v1 }
 0x9d1   : > { %2063 = vrsqrt.f32 %v1659_v2  ;;  %v1658_v5 = vadd.f32 1e-12, %v1656_v3 }
 0x9d3   : > { %2065 = vrsqrt.f32 %v1658_v5 }
 0x9de   : > { %v2064_v12 = vpop.eup %2063 }
 0x9df   : > { %v1663_v14 = vmul.f32 %v2064_v12, %v1647_v7 }
 0x9e0   : > { %v2066_v15 = vpop.eup %2065 }
 0x9e1   : > { %v1669_v16 = vmul.f32 %v1667_v10, %v1663_v14  ;;  %v1662_v17 = vmul.f32 %v2066_v15, %v1646_v4 }
 0x9e3   : > { %v1675_v18 = vadd.f32 %v1673_v13, %v1669_v16  ;;  %v1668_v19 = vmul.f32 %v1667_v10, %v1662_v17 }
 0x9e5   : > { %1677 = vst.msk [vmem:[#allocation2 + $0x8] sm:$0xff] %vm378_vm1, %v1675_v18  ;;  %1679 = vst.msk [vmem:[%s2155_s30 + $0x8] sm:$0xff] %vm378_vm1, %v1675_v18  ;;  %v1674_v20 = vadd.f32 %v1673_v13, %v1668_v19 }
 0x9e7   : > { %1676 = vst.msk [vmem:[#allocation2] sm:$0xff] %vm378_vm1, %v1674_v20  ;;  %1678 = vst.msk [vmem:[%s2155_s30] sm:$0xff] %vm378_vm1, %v1674_v20 }
 0x9e8 PF: > { %s17_s24 = sadd.s32 1, %s2073_s24  }
 0x9e9   : > { %p14_p5 = scmp.ge.s32.totalorder %s17_s24, 4  }
 0x9eb   :  { %16 = sbr.rel (!%p14_p5) target bundleno = 1 (0x1), region = 94 }

</bundles_post_ra>
